<compile_context>
chip_gen: v6e
topology: v6e:2x2x1
jax: 0.10.0
libtpu: 0.0.40
codegen_flags: <defaults>
</compile_context>

<pallas_src>
import functools

import jax
import jax.numpy as jnp
from jax.experimental import pallas as pl
from jax.experimental.pallas import tpu as pltpu


def _bn_pad_kernel(x_ref, scale_ref, shift_ref, o_ref, *, pad: int, h: int, w: int):
    # x_ref:     (cblk, H, W)        input activations for one batch element
    # scale_ref: (cblk, 1, 1) f32    folded BN scale  = weight * rsqrt(var+eps)
    # shift_ref: (cblk, 1, 1) f32    folded BN shift  = bias - mean*scale
    # o_ref:     (cblk, H+2p, W+2p)  padded output
    scale = scale_ref[...]
    shift = shift_ref[...]
    y = (x_ref[...].astype(jnp.float32) * scale + shift).astype(o_ref.dtype)
    if pad > 0:
        # Border value == shift (exactly the module's pad_values). Fill the
        # whole block with it, then overwrite the interior with the BN result.
        o_ref[...] = jnp.broadcast_to(shift, o_ref.shape).astype(o_ref.dtype)
        o_ref[:, pad:pad + h, pad:pad + w] = y
    else:
        o_ref[...] = y


def bn_and_pad(x, weight, bias, running_mean, running_var, *,
               eps: float = 1e-5, pad_pixels: int = 0, affine: bool = True):
    """Pallas equivalent of BNAndPadLayer(pad_pixels, C).forward(x) in eval mode."""
    N, C, H, W = x.shape
    p = int(pad_pixels)
    Hp, Wp = H + 2 * p, W + 2 * p

    inv_std = jax.lax.rsqrt(running_var.astype(jnp.float32) + jnp.float32(eps))
    if affine:
        scale = weight.astype(jnp.float32) * inv_std
        shift = bias.astype(jnp.float32) - running_mean.astype(jnp.float32) * scale
    else:
        scale = inv_std
        shift = -running_mean.astype(jnp.float32) * inv_std
    scale = scale.reshape(C, 1, 1)
    shift = shift.reshape(C, 1, 1)

    # Largest channel-block (divisor of C) whose output block stays under a
    # conservative per-buffer budget so double-buffered in+out fits everywhere
    # (including v7x's 64 MiB physical VMEM).
    budget_bytes = 2 * 1024 * 1024
    bytes_per_channel = Hp * Wp * x.dtype.itemsize
    cblk = 1
    for d in range(C, 0, -1):
        if C % d == 0 and d * bytes_per_channel <= budget_bytes:
            cblk = d
            break

    kernel = functools.partial(_bn_pad_kernel, pad=p, h=H, w=W)

    return pl.pallas_call(
        kernel,
        out_shape=jax.ShapeDtypeStruct((N, C, Hp, Wp), x.dtype),
        grid=(N, C // cblk),
        in_specs=[
            pl.BlockSpec((pl.Squeezed(), cblk, H, W),
                         lambda n, cb: (n, cb, 0, 0)),
            pl.BlockSpec((cblk, 1, 1), lambda n, cb: (cb, 0, 0)),
            pl.BlockSpec((cblk, 1, 1), lambda n, cb: (cb, 0, 0)),
        ],
        out_specs=pl.BlockSpec((pl.Squeezed(), cblk, Hp, Wp),
                               lambda n, cb: (n, cb, 0, 0)),
        compiler_params=pltpu.CompilerParams(
            dimension_semantics=("parallel", "parallel"),
            vmem_limit_bytes=32 * 1024 * 1024,
        ),
    )(x, scale, shift)


def _reference(x, weight, bias, running_mean, running_var, eps, pad_pixels,
               affine=True):
    """Pure-JAX reference matching the PyTorch module's eval-mode forward."""
    inv_std = 1.0 / jnp.sqrt(running_var + eps)
    w = weight if affine else jnp.ones_like(running_mean)
    b = bias if affine else jnp.zeros_like(running_mean)
    y = ((x - running_mean[None, :, None, None]) * inv_std[None, :, None, None]
         * w[None, :, None, None] + b[None, :, None, None])
    if pad_pixels > 0:
        pq = pad_pixels
        pad_values = b - running_mean * w * inv_std
        y = jnp.pad(y, ((0, 0), (0, 0), (pq, pq), (pq, pq)))
        pv = pad_values[None, :, None, None]
        y = y.at[:, :, :pq, :].set(pv)
        y = y.at[:, :, -pq:, :].set(pv)
        y = y.at[:, :, :, :pq].set(pv)
        y = y.at[:, :, :, -pq:].set(pv)
    return y


if __name__ == "__main__":
    key = jax.random.PRNGKey(0)
    kx, kw, kb, km, kv = jax.random.split(key, 5)

    N, C, H, W = 2, 4, 16, 16
    pad_pixels = 1
    eps = 1e-5

    x = jax.random.normal(kx, (N, C, H, W), dtype=jnp.float32)
    weight = jax.random.normal(kw, (C,), dtype=jnp.float32)
    bias = jax.random.normal(kb, (C,), dtype=jnp.float32)
    running_mean = jax.random.normal(km, (C,), dtype=jnp.float32)
    running_var = jax.random.uniform(kv, (C,), dtype=jnp.float32,
                                     minval=0.5, maxval=1.5)

    # pad_pixels > 0 path (BN + border pad with BN-of-zero value)
    out = bn_and_pad(x, weight, bias, running_mean, running_var,
                     eps=eps, pad_pixels=pad_pixels)
    out = jax.block_until_ready(out)
    ref = _reference(x, weight, bias, running_mean, running_var, eps, pad_pixels)
    assert out.shape == ref.shape, (out.shape, ref.shape)
    assert out.dtype == ref.dtype, (out.dtype, ref.dtype)
    assert jnp.allclose(out, ref, atol=1e-4, rtol=1e-4), \
        float(jnp.max(jnp.abs(out - ref)))

    # pad_pixels == 0 path (pure inference BatchNorm2d)
    out0 = jax.block_until_ready(
        bn_and_pad(x, weight, bias, running_mean, running_var,
                   eps=eps, pad_pixels=0))
    ref0 = _reference(x, weight, bias, running_mean, running_var, eps, 0)
    assert jnp.allclose(out0, ref0, atol=1e-4, rtol=1e-4), \
        float(jnp.max(jnp.abs(out0 - ref0)))

    print("KERNEL_OK")
</pallas_src>

<mosaic_0001>
module attributes {stable_mosaic.version = 11 : i64} {
  func.func @_bn_pad_kernel(%arg0: i32, %arg1: i32, %arg2: memref<1x4x16x16xf32, #tpu.memory_space<vmem>>, %arg3: memref<4x1x1xf32, #tpu.memory_space<vmem>>, %arg4: memref<4x1x1xf32, #tpu.memory_space<vmem>>, %arg5: memref<1x4x18x18xf32, #tpu.memory_space<vmem>>) attributes {dimension_semantics = [#tpu.dimension_semantics<parallel>, #tpu.dimension_semantics<parallel>], iteration_bounds = array<i64: 2, 1>, scalar_prefetch = 0 : i64, scratch_operands = 0 : i64, tpu.core_type = #tpu.core_type<tc>, window_params = [{transform_indices = @transform_0, window_bounds = array<i64: 1, 4, 16, 16>}, {transform_indices = @transform_1, window_bounds = array<i64: 4, 1, 1>}, {transform_indices = @transform_2, window_bounds = array<i64: 4, 1, 1>}, {transform_indices = @transform_3, window_bounds = array<i64: 1, 4, 18, 18>}]} {
    %c0 = arith.constant 0 : index
    %c0_0 = arith.constant 0 : index
    %c0_1 = arith.constant 0 : index
    %0 = vector.load %arg3[%c0, %c0_0, %c0_1] : memref<4x1x1xf32, #tpu.memory_space<vmem>>, vector<4x1x1xf32>
    %c0_2 = arith.constant 0 : index
    %c0_3 = arith.constant 0 : index
    %c0_4 = arith.constant 0 : index
    %1 = vector.load %arg4[%c0_2, %c0_3, %c0_4] : memref<4x1x1xf32, #tpu.memory_space<vmem>>, vector<4x1x1xf32>
    %c0_5 = arith.constant 0 : index
    %c0_6 = arith.constant 0 : index
    %c0_7 = arith.constant 0 : index
    %c0_8 = arith.constant 0 : index
    %2 = vector.load %arg2[%c0_5, %c0_6, %c0_7, %c0_8] : memref<1x4x16x16xf32, #tpu.memory_space<vmem>>, vector<1x4x16x16xf32>
    %3 = vector.shape_cast %2 : vector<1x4x16x16xf32> to vector<4x16x16xf32>
    %4 = vector.broadcast %0 : vector<4x1x1xf32> to vector<4x16x16xf32>
    %5 = arith.mulf %3, %4 : vector<4x16x16xf32>
    %6 = vector.broadcast %1 : vector<4x1x1xf32> to vector<4x16x16xf32>
    %7 = arith.addf %5, %6 : vector<4x16x16xf32>
    %8 = vector.shape_cast %1 : vector<4x1x1xf32> to vector<4x1x1xf32>
    %9 = vector.broadcast %8 : vector<4x1x1xf32> to vector<4x18x18xf32>
    %c0_9 = arith.constant 0 : index
    %c0_10 = arith.constant 0 : index
    %c0_11 = arith.constant 0 : index
    %c0_12 = arith.constant 0 : index
    %10 = vector.load %arg5[%c0_9, %c0_10, %c0_11, %c0_12] : memref<1x4x18x18xf32, #tpu.memory_space<vmem>>, vector<1x4x18x18xf32>
    %11 = vector.shape_cast %10 : vector<1x4x18x18xf32> to vector<4x18x18xf32>
    %12 = vector.shape_cast %9 : vector<4x18x18xf32> to vector<1x4x18x18xf32>
    tpu.vector_store %arg5[%c0_9, %c0_10, %c0_11, %c0_12], %12 {strides = array<i32>} : memref<1x4x18x18xf32, #tpu.memory_space<vmem>>, vector<1x4x18x18xf32>,
    %c0_13 = arith.constant 0 : index
    %c0_14 = arith.constant 0 : index
    %c1 = arith.constant 1 : index
    %c1_15 = arith.constant 1 : index
    %13 = vector.load %arg5[%c0_13, %c0_14, %c1, %c1_15] : memref<1x4x18x18xf32, #tpu.memory_space<vmem>>, vector<1x4x16x16xf32>
    %14 = vector.shape_cast %13 : vector<1x4x16x16xf32> to vector<4x16x16xf32>
    %15 = vector.shape_cast %7 : vector<4x16x16xf32> to vector<1x4x16x16xf32>
    tpu.vector_store %arg5[%c0_13, %c0_14, %c1, %c1_15], %15 {strides = array<i32>} : memref<1x4x18x18xf32, #tpu.memory_space<vmem>>, vector<1x4x16x16xf32>,
    return
  }
  func.func @transform_0(%arg0: i32, %arg1: i32) -> (i32, i32, i32, i32) {
    %c0_i32 = arith.constant 0 : i32
    %c0_i32_0 = arith.constant 0 : i32
    %c0_i32_1 = arith.constant 0 : i32
    return %arg0, %arg1, %c0_i32, %c0_i32_0 : i32, i32, i32, i32
  }
  func.func @transform_1(%arg0: i32, %arg1: i32) -> (i32, i32, i32) {
    %c0_i32 = arith.constant 0 : i32
    %c0_i32_0 = arith.constant 0 : i32
    %c0_i32_1 = arith.constant 0 : i32
    return %arg1, %c0_i32, %c0_i32_0 : i32, i32, i32
  }
  func.func @transform_2(%arg0: i32, %arg1: i32) -> (i32, i32, i32) {
    %c0_i32 = arith.constant 0 : i32
    %c0_i32_0 = arith.constant 0 : i32
    %c0_i32_1 = arith.constant 0 : i32
    return %arg1, %c0_i32, %c0_i32_0 : i32, i32, i32
  }
  func.func @transform_3(%arg0: i32, %arg1: i32) -> (i32, i32, i32, i32) {
    %c0_i32 = arith.constant 0 : i32
    %c0_i32_0 = arith.constant 0 : i32
    %c0_i32_1 = arith.constant 0 : i32
    return %arg0, %arg1, %c0_i32, %c0_i32_0 : i32, i32, i32, i32
  }
}

</mosaic_0001>

<bundles_post_ra>
// kernel: tpu_custom_call.1
= control target key start
LH: loop header
LB: loop body
LE: loop exit
PB: predicated region body
PF: predicated region fallthrough
CT: control target
= control target key end

     0   :  { %8 = vsyncpa [#allocation3], 0  ;;  %s906_s0 = inlined_call_operand.hbm [shape: f32[2,4,16,16], index: 0, kind: input, shape index: {}]   ;;  %s907_s1 = inlined_call_operand.vmem [shape: f32[4,1,1], index: 1, kind: input, shape index: {}]   ;;  %s908_s2 = inlined_call_operand.vmem [shape: f32[4,1,1], index: 2, kind: input, shape index: {}]   ;;  %s909_s3 = inlined_call_operand.vmem [shape: f32[2,4,18,18], index: 3, kind: output, shape index: {}]  }
   0x1   :  { %10 = vsyncpa [#allocation3 + $0x1], 0  ;;  %s734_s12 = smov 0   ;;  %s736_s13 = smov 0  }
   0x2   :  { %s738_s14 = smov 0   ;;  %s740_s15 = smov 0  }
   0x3   :  { %s742_s16 = smov 0   ;;  %s744_s17 = smov 0  }
   0x4 LB: > { %s544_s18 = sadd.s32 4294967295, %s707_s17   ;;  %s28_s19 = sadd.s32 1, %s703_s16  ;;  %s707_s17 = sphi %s744_s17, %s16_s17   ;;  %s703_s16 = sphi %s742_s16, %s917_s16   ;;  %s699_s15 = sphi %s740_s15, %s916_s15   ;;  %s695_s14 = sphi %s738_s14, %s915_s14   ;;  %s691_s13 = sphi %s736_s13, %s914_s13   ;;  %s687_s12 = sphi %s734_s12, %s913_s12  }
   0x5   : > { %p30_p0 = scmp.ge.s32.totalorder %s28_s19, 2  ;;  %s37_s20 = sadd.s32 1, %s695_s14 }
   0x6   : > { %p44_p1 = scmp.ne.s32.totalorder %s695_s14, %s691_s13  ;;  %p45_p2 = scmp.eq.s32.totalorder %s707_s17, 0 }
   0x7   : > { %s919_s19 = smov (%p30_p0, %s28_s19), 0  ;;  %p50_p4 = scmp.ne.s32.totalorder %s691_s13, %s687_s12 }
   0x8   : > { %p770_p3 = por %p45_p2, %p44_p1  ;;  %s32_s22 = ssub.s32 %s703_s16, %s919_s19 }
   0x9   : > { %p51_p5 = scmp.eq.s32.totalorder %s544_s18, 0  ;;  %p35_p6 = scmp.eq.s32.totalorder %s32_s22, 0 }
   0xa   : > { %p574_p8 = scmp.lt.s32.totalorder %s707_s17, 2  ;;  %s170_s25 = sand.u32 1, %s695_s14  }
   0xb   : > { %p777_p7 = por %p51_p5, %p50_p4  ;;  %s566_s26 = sshll.u32 %s703_s16, 10 }
   0xc   : > { %s783_s24 = scalar_select %p35_p6, %s695_s14, %s37_s20  }
   0xd   : > { %s550_s27 = sshll.u32 %s170_s25, 6  ;;  %s183_s30 = scalar_lea.hbm %s906_s0, %s566_s26 }
   0xe   : > { %s174_s4 = scalar_lea.vmem [#allocation2], %s550_s27  ;;  %p792_p9 = pnand %p574_p8, %p770_p3 }
   0xf   : > { %s184_s5 = sshll.u32 %s174_s4, 4  ;;  %s171_s7 = scalar_lea.sflag [#allocation3], %s170_s25  ;;  %s185_s5 = int_to_ptr.vmem [resolvable:$true] %s184_s5 }
  0x10   : > { %p631_p10 = pneg %p792_p9  ;;  %s642_s8 = scalar_lea.vmem %s185_s5, 1024 }
  0x11   : > { %p643_p11 = scmp.ne.s32.totalorder %s185_s5, %s642_s8  ;;  %s709_s9 = smov [#allocation2]  }
  0x12   : > { %s647_s10 = sshll.u32 %s709_s9, 4  ;;  %s648_s10 = int_to_ptr.vmem [resolvable:$false] %s647_s10 }
  0x13   : > { %p645_p12 = pnand %p643_p11, %p631_p10  ;;  %s649_s11 = scalar_lea.vmem %s648_s10, 2048 }
  0x14   : > { %p650_p0 = scmp.lt.s32.totalorder %s185_s5, %s648_s10  ;;  %p651_p1 = scmp.lt.s32.totalorder %s649_s11, %s642_s8 }
  0x15   : > { %p646_p13 = pneg %p645_p12 }
  0x16   : > { %p652_p2 = por %p651_p1, %p650_p0 }
  0x18   : > { %p653_p3 = pnand %p652_p2, %p646_p13 }
  0x1a   : > { %656 = shalt.err (!%p653_p3)
}
  0x1b   : > { %s710_s12 = smov 128   ;;  %s711_s18 = smov 8  }
  0x1c   : > { %573 = dma.hbm_to_vmem [thread:$0]  (!%p792_p9), %s183_s30, 1024, %s185_s5, %s171_s7, %s710_s12, %s710_s12, %s711_s18  }
  0x1d   : > { %p553_p4 = scmp.ge.s32.totalorder %s707_s17, 1  ;;  %p192_p5 = scmp.lt.s32.totalorder %s707_s17, 3 }
  0x1f   : > { %p193_p6 = pnand %p553_p4, %p192_p5 }
  0x20   : > { %s198_s20 = sand.u32 (!%p193_p6), 1, %s691_s13  }
  0x21   : > { %196 = sbr.rel (%p193_p6) target bundleno = 303 (0x12f), region = 32  ;;  %s554_s21 = sshll.u32 (!%p193_p6), %s198_s20, 6 }
  0x22   : > { %s199_s22 = scalar_lea.sflag (!%p193_p6), [#allocation3], %s198_s20  ;;  %s803_s25 = scalar_lea.vmem (!%p193_p6), [#allocation2], %s554_s21 }
  0x26   : > { %682 = dma.done.wait (%p777_p7), %s199_s22, 1024  }
  0x27   : > { %684 = vsyncadd (%p777_p7), %s199_s22, 4294966272  ;;  %v712_v0 = vmov 0   ;;  %v558_v1 = vld [vmem:[%s907_s1 + $0x2] ss:$0 sm:$0xff]  ;;  %v556_v2 = vld [vmem:[%s907_s1] ss:$0 sm:$0xff] }
  0x28   : > { %628 = vset.pattern.permute.xlu1 %v712_v0  ;;  %627 = vset.pattern.permute.xlu0 %v712_v0  ;;  %v559_v3 = vld [vmem:[%s907_s1 + $0x3] ss:$0 sm:$0xff]  ;;  %v557_v4 = vld [vmem:[%s907_s1 + $0x1] ss:$0 sm:$0xff]  ;;  %v560_v6 = vld [vmem:[%s908_s2] ss:$0 sm:$0xff] }
  0x29   : > { %305 = vperm.xlu1 %628, %v558_v1   ;;  %297 = vperm.xlu0 %627, %v556_v2   ;;  %v561_v5 = vld [vmem:[%s908_s2 + $0x1] ss:$0 sm:$0xff]  ;;  %v563_v7 = vld [vmem:[%s908_s2 + $0x3] ss:$0 sm:$0xff]  ;;  %v562_v8 = vld [vmem:[%s908_s2 + $0x2] ss:$0 sm:$0xff] }
  0x2a   : > { %p250_p7 = scmp.lt.s32.totalorder %s699_s15, 1  ;;  %v268_v11 = vld [vmem:[%s803_s25] sm:$0xff]  ;;  %v269_v12 = vld [vmem:[%s803_s25 + $0x8] sm:$0xff]  ;;  %vm364_vm0 = vcmask 146432   ;;  %vm367_vm1 = vcmask 140288   ;;  %v270_v17 = vld [vmem:[%s803_s25 + $0x10] sm:$0xff] }
  0x2b   : > { %v271_v18 = vld [vmem:[%s803_s25 + $0x18] sm:$0xff]  ;;  %v272_v25 = vld [vmem:[%s803_s25 + $0x20] sm:$0xff]  ;;  %v273_v26 = vld [vmem:[%s803_s25 + $0x28] sm:$0xff]  ;;  %vm410_vm2 = vcmask 138248  }
  0x2c   : > { %s921_s15 = smov (!%p250_p7, %s699_s15), 1  ;;  %v274_v33 = vld [vmem:[%s803_s25 + $0x30] sm:$0xff]  ;;  %v275_v34 = vld [vmem:[%s803_s25 + $0x38] sm:$0xff] }
  0x2d   : > { %309 = vperm.xlu1 %628, %v559_v3   ;;  %301 = vperm.xlu0 %627, %v557_v4   ;;  %s567_s20 = smul.u32 96, %s921_s15  ;;  %s713_s15 = smov 1  }
  0x2f   : > { %s840_s26 = scalar_lea.vmem %s909_s3, %s567_s20 }
  0x31   : > { %345 = vperm.xlu1 %628, %v561_v5   ;;  %341 = vperm.xlu0 %627, %v560_v6  }
  0x35   : > { %353 = vperm.xlu1 %628, %v563_v7   ;;  %349 = vperm.xlu0 %627, %v562_v8  }
  0xa4   : > { %v306_v9 = vpop.permute.xlu1 %305  ;;  %v298_v10 = vpop.permute.xlu0 %297 }
  0xa5   : > { %v312_v15 = vmul.f32 %v298_v10, %v268_v11  ;;  %v313_v16 = vmul.f32 %v298_v10, %v269_v12  ;;  %v316_v31 = vmul.f32 %v306_v9, %v272_v25  ;;  %v317_v32 = vmul.f32 %v306_v9, %v273_v26 }
  0xa8   : > { %v310_v13 = vpop.permute.xlu1 %309  ;;  %v302_v14 = vpop.permute.xlu0 %301 }
  0xa9   : > { %v314_v23 = vmul.f32 %v302_v14, %v270_v17  ;;  %v315_v24 = vmul.f32 %v302_v14, %v271_v18  ;;  %v318_v37 = vmul.f32 %v310_v13, %v274_v33  ;;  %v319_v38 = vmul.f32 %v310_v13, %v275_v34 }
  0xac   : > { %v346_v19 = vpop.permute.xlu1 %345  ;;  %v342_v20 = vpop.permute.xlu0 %341 }
  0xad   : > { %369 = vst.msk [vmem:[%s840_s26 + $0x18] sm:$0xff] %vm364_vm0, %v346_v19  ;;  %370 = vst.msk [vmem:[%s840_s26 + $0x20] sm:$0xff] %vm364_vm0, %v346_v19  ;;  %v357_v21 = vadd.f32 %v342_v20, %v313_v16  ;;  %v356_v22 = vadd.f32 %v342_v20, %v312_v15  ;;  %v359_v29 = vadd.f32 %v346_v19, %v315_v24 }
  0xae   : > { %371 = vst.msk [vmem:[%s840_s26 + $0x28] sm:$0x3] %vm367_vm1, %v346_v19  ;;  %368 = vst.msk [vmem:[%s840_s26 + $0x10] sm:$0x3] %vm367_vm1, %v342_v20  ;;  %v358_v30 = vadd.f32 %v346_v19, %v314_v23 }
  0xaf   : > { %365 = vst.msk [vmem:[%s840_s26] sm:$0xff] %vm364_vm0, %v342_v20  ;;  %366 = vst.msk [vmem:[%s840_s26 + $0x8] sm:$0xff] %vm364_vm0, %v342_v20  ;;  %388 = vrot.lane.b32.xlu1 %v357_v21, %s713_s15  ;;  %386 = vrot.lane.b32.xlu0 %v356_v22, %s713_s15 }
  0xb0   : > { %v354_v27 = vpop.permute.xlu1 %353  ;;  %v350_v28 = vpop.permute.xlu0 %349 }
  0xb1   : > { %375 = vst.msk [vmem:[%s840_s26 + $0x48] sm:$0xff] %vm364_vm0, %v354_v27  ;;  %376 = vst.msk [vmem:[%s840_s26 + $0x50] sm:$0xff] %vm364_vm0, %v354_v27  ;;  %v361_v35 = vadd.f32 %v350_v28, %v317_v32  ;;  %v360_v36 = vadd.f32 %v350_v28, %v316_v31  ;;  %v363_v39 = vadd.f32 %v354_v27, %v319_v38 }
  0xb2   : > { %377 = vst.msk [vmem:[%s840_s26 + $0x58] sm:$0x3] %vm367_vm1, %v354_v27  ;;  %374 = vst.msk [vmem:[%s840_s26 + $0x40] sm:$0x3] %vm367_vm1, %v350_v28  ;;  %v362_v40 = vadd.f32 %v354_v27, %v318_v37 }
  0xb3   : > { %372 = vst.msk [vmem:[%s840_s26 + $0x30] sm:$0xff] %vm364_vm0, %v350_v28  ;;  %373 = vst.msk [vmem:[%s840_s26 + $0x38] sm:$0xff] %vm364_vm0, %v350_v28  ;;  %392 = vrot.lane.b32.xlu1 %v359_v29, %s713_s15  ;;  %390 = vrot.lane.b32.xlu0 %v358_v30, %s713_s15 }
  0xb7   : > { %396 = vrot.lane.b32.xlu1 %v361_v35, %s713_s15  ;;  %394 = vrot.lane.b32.xlu0 %v360_v36, %s713_s15 }
  0xbb   : > { %400 = vrot.lane.b32.xlu1 %v363_v39, %s713_s15  ;;  %398 = vrot.lane.b32.xlu0 %v362_v40, %s713_s15 }
 0x121   : > { %v389_v41 = vpop.permute.xlu1 %388  ;;  %v387_v42 = vpop.permute.xlu0 %386 }
 0x122   : > { %412 = vst.msk [vmem:[%s840_s26 + $0x9] sm:$0xff] %vm410_vm2, %v389_v41  ;;  %411 = vst.msk [vmem:[%s840_s26 + $0x1] sm:$0xff] %vm410_vm2, %v387_v42 }
 0x125   : > { %v393_v43 = vpop.permute.xlu1 %392  ;;  %v391_v44 = vpop.permute.xlu0 %390 }
 0x126   : > { %414 = vst.msk [vmem:[%s840_s26 + $0x21] sm:$0xff] %vm410_vm2, %v393_v43  ;;  %413 = vst.msk [vmem:[%s840_s26 + $0x19] sm:$0xff] %vm410_vm2, %v391_v44 }
 0x129   : > { %v397_v45 = vpop.permute.xlu1 %396  ;;  %v395_v46 = vpop.permute.xlu0 %394 }
 0x12a   : > { %416 = vst.msk [vmem:[%s840_s26 + $0x39] sm:$0xff] %vm410_vm2, %v397_v45  ;;  %415 = vst.msk [vmem:[%s840_s26 + $0x31] sm:$0xff] %vm410_vm2, %v395_v46 }
 0x12d   : > { %v401_v47 = vpop.permute.xlu1 %400  ;;  %v399_v48 = vpop.permute.xlu0 %398 }
 0x12e   : > { %418 = vst.msk [vmem:[%s840_s26 + $0x51] sm:$0xff] %vm410_vm2, %v401_v47  ;;  %417 = vst.msk [vmem:[%s840_s26 + $0x49] sm:$0xff] %vm410_vm2, %v399_v48 }
 0x12f PF: > { %s16_s17 = sadd.s32 1, %s707_s17   ;;  %s913_s12 = smov %s691_s13 }
 0x130   : > { %p13_p8 = scmp.ge.s32.totalorder %s16_s17, 4   ;;  %s914_s13 = smov %s695_s14 }
 0x131   : > { %s915_s14 = smov %s783_s24  ;;  %s916_s15 = smov %s703_s16 }
 0x132   : > { %s917_s16 = smov %s919_s19  ;;  %15 = sbr.rel (!%p13_p8) target bundleno = 4 (0x4), region = 78 }
 0x137   :  { %451 = vsyncpa [#allocation3], 1 }
 0x138   :  { %453 = vsyncpa [#allocation3 + $0x1], 1 }

</bundles_post_ra>
